<compile_context>
chip_gen: v5e
topology: v5e:2x2
jax: 0.10.0
libtpu: 0.0.40
codegen_flags: <defaults>
</compile_context>

<pallas_src>
import jax
import jax.numpy as jnp
from jax import lax
from jax.experimental import pallas as pl
from jax.experimental.pallas import tpu as pltpu


def _make_mixvpr_kernel(tb, C, mm_dtype):
    """Kernel over one batch block: x slab is (tb*C, HW)."""

    def kernel(x_ref, w1t_ref, b1_ref, w2t_ref, b2_ref, wr_ref, wct_ref,
               bias_ref, out_ref):
        R = wr_ref.shape[0]                                     # out_rows

        # ---- FeatureMixer (mix_depth=1): LN stats / residual in f32, MXU in mm_dtype.
        xf = x_ref[...].astype(jnp.float32)                     # (tb*C, HW)
        mu = jnp.mean(xf, axis=-1, keepdims=True)
        var = jnp.mean((xf - mu) ** 2, axis=-1, keepdims=True)
        # gamma/beta are folded into w1t/b1 on the host; y only feeds that Linear.
        y = ((xf - mu) * lax.rsqrt(var + 1e-5)).astype(mm_dtype)
        h = jnp.dot(y, w1t_ref[...], preferred_element_type=jnp.float32) + b1_ref[...]
        h = jnp.maximum(h, 0.0).astype(mm_dtype)                # (tb*C, hidden)
        z = jnp.dot(h, w2t_ref[...], preferred_element_type=jnp.float32) + b2_ref[...]
        xm = (xf + z).astype(mm_dtype)                          # residual, (tb*C, HW)

        # ---- row_proj first (bias folded into bias_ref), as one NT matmul that
        #      yields a lane-dense (R, tb*C) result without any transpose.
        u2 = lax.dot_general(wr_ref[...], xm, (((1,), (1,)), ((), ())),
                             preferred_element_type=jnp.float32)        # (R, tb*C)

        # ---- gather per-batch (R, C) panels (static lane slices) into one
        #      (tb*R, C) tile so the channel contraction is a SINGLE MXU matmul.
        u_stack = jnp.concatenate(
            [u2[:, b * C:(b + 1) * C] for b in range(tb)], axis=0).astype(mm_dtype)
        rt = jnp.dot(u_stack, wct_ref[...],
                     preferred_element_type=jnp.float32) + bias_ref[...]  # (tb*R, OC)

        # ---- per-batch L2-normalize + store.  Pure VPU/store epilogue on tiny
        #      (R, OC) tiles (no matmuls / transposes in this loop anymore).
        for b in range(tb):                                     # static unroll
            rb = rt[b * R:(b + 1) * R, :]                       # (R, OC)
            ss = jnp.sum(rb * rb)
            out_ref[b] = rb * lax.rsqrt(jnp.maximum(ss, 1e-24))  # == /max(||r||,1e-12)

    return kernel


def mixvpr_forward(x_nchw, params, *, tb=8, matmul_dtype=jnp.bfloat16,
                   vmem_limit_bytes=48 * 1024 * 1024):
    """MixVPR forward.

    Production sizing (C=1024, hw=400, OC=512), bf16 matmul operands:
      * v5e/v6e (128 MiB VMEM): tb=8, vmem_limit_bytes ~ 96-110 MiB.
      * v7x (64 MiB VMEM, 2 TensorCores): tb=4 and keep num_blocks even so the
        "parallel" grid axis load-balances across both cores; ~48-56 MiB limit.
      * Optionally zero-pad hw (and hidden) to a multiple of 128/256 in the
        weights; if so, LN mean/var must still divide by the true hw.
    """
    ln_g, ln_b, w1, b1, w2, b2, wc, bc, wr, br = params
    B, C, H, W = x_nchw.shape
    hw = H * W
    hidden = w1.shape[0]
    oc = wc.shape[0]
    orows = wr.shape[0]

    # Batch-block size: largest divisor of B that is <= tb, so blocks tile the
    # batch exactly and no zero-padded HBM copy of the activations is needed.
    tb = max(1, min(int(tb), B))
    while B % tb:
        tb -= 1
    num_blocks = B // tb

    x2 = x_nchw.reshape(B * C, hw).astype(matmul_dtype)         # batch stacked into M

    # Host-side glue: fold LayerNorm gamma/beta into the first mixer Linear,
    # fuse channel/row biases, pre-transpose and pre-cast all MXU operands.
    w1t = w1.T.astype(jnp.float32)                              # (hw, hidden)
    w1t_g = (ln_g[:, None] * w1t).astype(matmul_dtype)          # gamma folded
    b1_f = (ln_b @ w1t + b1).reshape(1, hidden).astype(jnp.float32)   # beta folded
    w2t = w2.T.astype(matmul_dtype)                             # (hidden, hw)
    wr_mm = wr.astype(matmul_dtype)                             # (orows, hw)
    wct = wc.T.astype(matmul_dtype)                             # (C, oc)
    wr_sum = jnp.sum(wr, axis=1)                                # (orows,)  (f32)
    bias_rc = wr_sum[:, None] * bc[None, :] + br[:, None]       # (orows, oc)
    bias_tiled = jnp.tile(bias_rc, (tb, 1)).astype(jnp.float32)  # (tb*orows, oc)
    b2_2 = b2.reshape(1, hw).astype(jnp.float32)

    def cspec(shape):
        # Resident constants (constant index_map -> fetched once, never refetched).
        # TODO(synk): on v7x at real dims, single-buffer these (pipeline_mode =
        # pl.Buffered(1)) to reclaim ~half their VMEM footprint.
        return pl.BlockSpec(shape, lambda i: (0, 0))

    out = pl.pallas_call(
        _make_mixvpr_kernel(tb, C, matmul_dtype),
        out_shape=jax.ShapeDtypeStruct((B, orows, oc), jnp.float32),
        grid=(num_blocks,),
        in_specs=[
            pl.BlockSpec((tb * C, hw), lambda i: (i, 0)),       # batch-block input slab
            cspec((hw, hidden)), cspec((1, hidden)),            # mixer W1^T*gamma, fused b1
            cspec((hidden, hw)), cspec((1, hw)),                # mixer W2^T, b2
            cspec((orows, hw)),                                 # row_proj W (bias folded)
            cspec((C, oc)),                                     # channel_proj W^T
            cspec((tb * orows, oc)),                            # fused bias (bc*sum(Wr)+br), tiled
        ],
        out_specs=pl.BlockSpec((tb, orows, oc), lambda i: (i, 0, 0)),
        compiler_params=pltpu.CompilerParams(
            dimension_semantics=("parallel",),                  # batch blocks independent
            vmem_limit_bytes=vmem_limit_bytes),
    )(x2, w1t_g, b1_f, w2t, b2_2, wr_mm, wct, bias_tiled)

    # Kernel emits (B, orows, oc); reference flatten is channel-major, row-minor.
    return jnp.transpose(out, (0, 2, 1)).reshape(B, oc * orows)


def mixvpr_reference(x_nchw, params):
    """Pure-JAX f32 reference mirroring the PyTorch forward (with FeatureMixer mix)."""
    ln_g, ln_b, w1, b1, w2, b2, wc, bc, wr, br = params
    B, C, H, W = x_nchw.shape
    x = x_nchw.reshape(B, C, H * W).astype(jnp.float32)
    mu = x.mean(-1, keepdims=True)
    var = ((x - mu) ** 2).mean(-1, keepdims=True)
    y = (x - mu) / jnp.sqrt(var + 1e-5) * ln_g + ln_b
    h = jnp.maximum(jnp.einsum("bcs,hs->bch", y, w1) + b1, 0.0)
    z = jnp.einsum("bch,sh->bcs", h, w2) + b2
    x = x + z
    t = jnp.einsum("bcs,oc->bos", x, wc) + bc[None, :, None]
    r = jnp.einsum("bos,js->boj", t, wr) + br
    flat = r.reshape(B, -1)
    n = jnp.linalg.norm(flat, axis=-1, keepdims=True)
    return flat / jnp.maximum(n, 1e-12)


if __name__ == "__main__":
    # Small shapes consistent with MixVPR: in_channels=32, in_h=in_w=4 (hw=16),
    # out_channels=32, mix_depth=1, mlp_ratio=1, out_rows=4; batch=4 with batch
    # block tb=2 so the (parallel) grid has 2 (even) steps.
    B, C, H, W = 4, 32, 4, 4
    hw = H * W
    out_channels, out_rows, mlp_ratio = 32, 4, 1
    hidden = hw * mlp_ratio

    key = jax.random.PRNGKey(0)
    keys = jax.random.split(key, 10)

    def init(k, shape, fan_in):
        bound = 1.0 / (fan_in ** 0.5)
        return jax.random.uniform(k, shape, jnp.float32, -bound, bound)

    x = jax.random.normal(keys[0], (B, C, H, W), jnp.float32)
    ln_g = jnp.ones((hw,), jnp.float32)
    ln_b = jnp.zeros((hw,), jnp.float32)
    w1 = init(keys[1], (hidden, hw), hw)
    b1 = init(keys[2], (hidden,), hw)
    w2 = init(keys[3], (hw, hidden), hidden)
    b2 = init(keys[4], (hw,), hidden)
    wc = init(keys[5], (out_channels, C), C)
    bc = init(keys[6], (out_channels,), C)
    wr = init(keys[7], (out_rows, hw), hw)
    br = init(keys[8], (out_rows,), hw)

    params = (ln_g, ln_b, w1, b1, w2, b2, wc, bc, wr, br)
    ref = mixvpr_reference(x, params)

    # f32 MXU path: tight check of the algebra (LN fold, bias fusion, reorder,
    # batched channel contraction).
    out_f32 = mixvpr_forward(x, params, tb=2, matmul_dtype=jnp.float32)
    jax.block_until_ready(out_f32)
    assert out_f32.shape == (B, out_channels * out_rows)
    assert jnp.allclose(out_f32, ref, atol=2e-5, rtol=2e-5), "f32 path mismatch vs reference"

    # bf16 MXU operands (production path per perf review): looser tolerance.
    out_bf16 = mixvpr_forward(x, params, tb=2, matmul_dtype=jnp.bfloat16)
    jax.block_until_ready(out_bf16)
    assert out_bf16.shape == (B, out_channels * out_rows)
    assert jnp.allclose(out_bf16, ref, atol=3e-2, rtol=3e-2), "bf16 path mismatch vs reference"

    print("KERNEL_OK")
</pallas_src>

<mosaic_0001>
module attributes {stable_mosaic.version = 11 : i64} {
  func.func @kernel(%arg0: i32, %arg1: memref<64x16xf32, #tpu.memory_space<vmem>>, %arg2: memref<16x16xf32, #tpu.memory_space<vmem>>, %arg3: memref<1x16xf32, #tpu.memory_space<vmem>>, %arg4: memref<16x16xf32, #tpu.memory_space<vmem>>, %arg5: memref<1x16xf32, #tpu.memory_space<vmem>>, %arg6: memref<4x16xf32, #tpu.memory_space<vmem>>, %arg7: memref<32x32xf32, #tpu.memory_space<vmem>>, %arg8: memref<8x32xf32, #tpu.memory_space<vmem>>, %arg9: memref<2x4x32xf32, #tpu.memory_space<vmem>>) attributes {dimension_semantics = [#tpu.dimension_semantics<parallel>], iteration_bounds = array<i64: 2>, scalar_prefetch = 0 : i64, scratch_operands = 0 : i64, tpu.core_type = #tpu.core_type<tc>, window_params = [{transform_indices = @transform_0, window_bounds = array<i64: 64, 16>}, {pipeline_mode = #tpu.pipeline_mode<synchronous>, transform_indices = @transform_1, window_bounds = array<i64: 16, 16>}, {pipeline_mode = #tpu.pipeline_mode<synchronous>, transform_indices = @transform_2, window_bounds = array<i64: 1, 16>}, {pipeline_mode = #tpu.pipeline_mode<synchronous>, transform_indices = @transform_3, window_bounds = array<i64: 16, 16>}, {pipeline_mode = #tpu.pipeline_mode<synchronous>, transform_indices = @transform_4, window_bounds = array<i64: 1, 16>}, {pipeline_mode = #tpu.pipeline_mode<synchronous>, transform_indices = @transform_5, window_bounds = array<i64: 4, 16>}, {pipeline_mode = #tpu.pipeline_mode<synchronous>, transform_indices = @transform_6, window_bounds = array<i64: 32, 32>}, {pipeline_mode = #tpu.pipeline_mode<synchronous>, transform_indices = @transform_7, window_bounds = array<i64: 8, 32>}, {transform_indices = @transform_8, window_bounds = array<i64: 2, 4, 32>}]} {
    %c0 = arith.constant 0 : index
    %c0_0 = arith.constant 0 : index
    %0 = vector.load %arg1[%c0, %c0_0] : memref<64x16xf32, #tpu.memory_space<vmem>>, vector<64x16xf32>
    %cst = arith.constant dense<0.000000e+00> : vector<64xf32>
    %1 = vector.multi_reduction <add>, %0, %cst [1] : vector<64x16xf32> to vector<64xf32>
    %2 = vector.shape_cast %1 : vector<64xf32> to vector<64x1xf32>
    %cst_1 = arith.constant 1.600000e+01 : f32
    %3 = vector.broadcast %cst_1 : f32 to vector<64x1xf32>
    %4 = arith.divf %2, %3 : vector<64x1xf32>
    %5 = vector.broadcast %4 : vector<64x1xf32> to vector<64x16xf32>
    %6 = arith.subf %0, %5 : vector<64x16xf32>
    %7 = arith.mulf %6, %6 : vector<64x16xf32>
    %cst_2 = arith.constant dense<0.000000e+00> : vector<64xf32>
    %8 = vector.multi_reduction <add>, %7, %cst_2 [1] : vector<64x16xf32> to vector<64xf32>
    %9 = vector.shape_cast %8 : vector<64xf32> to vector<64x1xf32>
    %cst_3 = arith.constant 1.600000e+01 : f32
    %10 = vector.broadcast %cst_3 : f32 to vector<64x1xf32>
    %11 = arith.divf %9, %10 : vector<64x1xf32>
    %12 = vector.broadcast %4 : vector<64x1xf32> to vector<64x16xf32>
    %13 = arith.subf %0, %12 : vector<64x16xf32>
    %cst_4 = arith.constant 9.99999974E-6 : f32
    %14 = vector.broadcast %cst_4 : f32 to vector<64x1xf32>
    %15 = arith.addf %11, %14 : vector<64x1xf32>
    %16 = math.rsqrt %15 : vector<64x1xf32>
    %17 = vector.broadcast %16 : vector<64x1xf32> to vector<64x16xf32>
    %18 = arith.mulf %13, %17 : vector<64x16xf32>
    %c0_5 = arith.constant 0 : index
    %c0_6 = arith.constant 0 : index
    %19 = vector.load %arg2[%c0_5, %c0_6] : memref<16x16xf32, #tpu.memory_space<vmem>>, vector<16x16xf32>
    %cst_7 = arith.constant dense<0.000000e+00> : vector<64x16xf32>
    %20 = tpu.matmul %18, %19, %cst_7 {dimension_numbers = #tpu.dot_dimension_numbers<[1], [0], [0], [1], [0, 0, 1, 1], [], []>} : vector<64x16xf32>, vector<16x16xf32>, vector<64x16xf32> -> vector<64x16xf32>
    %c0_8 = arith.constant 0 : index
    %c0_9 = arith.constant 0 : index
    %21 = vector.load %arg3[%c0_8, %c0_9] : memref<1x16xf32, #tpu.memory_space<vmem>>, vector<1x16xf32>
    %22 = vector.broadcast %21 : vector<1x16xf32> to vector<64x16xf32>
    %23 = arith.addf %20, %22 : vector<64x16xf32>
    %cst_10 = arith.constant 0.000000e+00 : f32
    %24 = vector.broadcast %cst_10 : f32 to vector<64x16xf32>
    %25 = arith.maximumf %23, %24 : vector<64x16xf32>
    %c0_11 = arith.constant 0 : index
    %c0_12 = arith.constant 0 : index
    %26 = vector.load %arg4[%c0_11, %c0_12] : memref<16x16xf32, #tpu.memory_space<vmem>>, vector<16x16xf32>
    %cst_13 = arith.constant dense<0.000000e+00> : vector<64x16xf32>
    %27 = tpu.matmul %25, %26, %cst_13 {dimension_numbers = #tpu.dot_dimension_numbers<[1], [0], [0], [1], [0, 0, 1, 1], [], []>} : vector<64x16xf32>, vector<16x16xf32>, vector<64x16xf32> -> vector<64x16xf32>
    %c0_14 = arith.constant 0 : index
    %c0_15 = arith.constant 0 : index
    %28 = vector.load %arg5[%c0_14, %c0_15] : memref<1x16xf32, #tpu.memory_space<vmem>>, vector<1x16xf32>
    %29 = vector.broadcast %28 : vector<1x16xf32> to vector<64x16xf32>
    %30 = arith.addf %27, %29 : vector<64x16xf32>
    %31 = arith.addf %0, %30 : vector<64x16xf32>
    %c0_16 = arith.constant 0 : index
    %c0_17 = arith.constant 0 : index
    %32 = vector.load %arg6[%c0_16, %c0_17] : memref<4x16xf32, #tpu.memory_space<vmem>>, vector<4x16xf32>
    %cst_18 = arith.constant dense<0.000000e+00> : vector<4x64xf32>
    %33 = tpu.matmul %32, %31, %cst_18 {dimension_numbers = #tpu.dot_dimension_numbers<[1], [1], [0], [0], [0, 0, 1, 0], [], []>} : vector<4x16xf32>, vector<64x16xf32>, vector<4x64xf32> -> vector<4x64xf32>
    %34 = vector.extract_strided_slice %33 {offsets = [0, 0], sizes = [4, 32], strides = [1, 1]} : vector<4x64xf32> to vector<4x32xf32>
    %35 = vector.extract_strided_slice %33 {offsets = [0, 32], sizes = [4, 32], strides = [1, 1]} : vector<4x64xf32> to vector<4x32xf32>
    %36 = tpu.concatenate %34, %35 in 0 : vector<4x32xf32>, vector<4x32xf32> -> vector<8x32xf32>
    %c0_19 = arith.constant 0 : index
    %c0_20 = arith.constant 0 : index
    %37 = vector.load %arg7[%c0_19, %c0_20] : memref<32x32xf32, #tpu.memory_space<vmem>>, vector<32x32xf32>
    %cst_21 = arith.constant dense<0.000000e+00> : vector<8x32xf32>
    %38 = tpu.matmul %36, %37, %cst_21 {dimension_numbers = #tpu.dot_dimension_numbers<[1], [0], [0], [1], [0, 0, 1, 1], [], []>} : vector<8x32xf32>, vector<32x32xf32>, vector<8x32xf32> -> vector<8x32xf32>
    %c0_22 = arith.constant 0 : index
    %c0_23 = arith.constant 0 : index
    %39 = vector.load %arg8[%c0_22, %c0_23] : memref<8x32xf32, #tpu.memory_space<vmem>>, vector<8x32xf32>
    %40 = arith.addf %38, %39 : vector<8x32xf32>
    %41 = vector.extract_strided_slice %40 {offsets = [0, 0], sizes = [4, 32], strides = [1, 1]} : vector<8x32xf32> to vector<4x32xf32>
    %42 = arith.mulf %41, %41 : vector<4x32xf32>
    %43 = vector.shape_cast %42 : vector<4x32xf32> to vector<1x4x32xf32>
    %cst_24 = arith.constant dense<0.000000e+00> : vector<1xf32>
    %44 = vector.multi_reduction <add>, %43, %cst_24 [1, 2] : vector<1x4x32xf32> to vector<1xf32>
    %45 = vector.shape_cast %44 : vector<1xf32> to vector<1x1x1xf32>
    %46 = vector.extract %45[0, 0, 0] : f32 from vector<1x1x1xf32>
    %cst_25 = arith.constant 1.000000e-24 : f32
    %47 = arith.maximumf %46, %cst_25 : f32
    %48 = math.rsqrt %47 : f32
    %49 = vector.broadcast %48 : f32 to vector<4x32xf32>
    %50 = arith.mulf %41, %49 : vector<4x32xf32>
    %c0_26 = arith.constant 0 : index
    %c0_27 = arith.constant 0 : index
    %c0_28 = arith.constant 0 : index
    %51 = vector.load %arg9[%c0_26, %c0_27, %c0_28] : memref<2x4x32xf32, #tpu.memory_space<vmem>>, vector<1x4x32xf32>
    %52 = vector.shape_cast %51 : vector<1x4x32xf32> to vector<4x32xf32>
    %53 = vector.shape_cast %50 : vector<4x32xf32> to vector<1x4x32xf32>
    tpu.vector_store %arg9[%c0_26, %c0_27, %c0_28], %53 {strides = array<i32>} : memref<2x4x32xf32, #tpu.memory_space<vmem>>, vector<1x4x32xf32>,
    %54 = vector.extract_strided_slice %40 {offsets = [4, 0], sizes = [4, 32], strides = [1, 1]} : vector<8x32xf32> to vector<4x32xf32>
    %55 = arith.mulf %54, %54 : vector<4x32xf32>
    %56 = vector.shape_cast %55 : vector<4x32xf32> to vector<1x4x32xf32>
    %cst_29 = arith.constant dense<0.000000e+00> : vector<1xf32>
    %57 = vector.multi_reduction <add>, %56, %cst_29 [1, 2] : vector<1x4x32xf32> to vector<1xf32>
    %58 = vector.shape_cast %57 : vector<1xf32> to vector<1x1x1xf32>
    %59 = vector.extract %58[0, 0, 0] : f32 from vector<1x1x1xf32>
    %cst_30 = arith.constant 1.000000e-24 : f32
    %60 = arith.maximumf %59, %cst_30 : f32
    %61 = math.rsqrt %60 : f32
    %62 = vector.broadcast %61 : f32 to vector<4x32xf32>
    %63 = arith.mulf %54, %62 : vector<4x32xf32>
    %c1 = arith.constant 1 : index
    %c0_31 = arith.constant 0 : index
    %c0_32 = arith.constant 0 : index
    %64 = vector.load %arg9[%c1, %c0_31, %c0_32] : memref<2x4x32xf32, #tpu.memory_space<vmem>>, vector<1x4x32xf32>
    %65 = vector.shape_cast %64 : vector<1x4x32xf32> to vector<4x32xf32>
    %66 = vector.shape_cast %63 : vector<4x32xf32> to vector<1x4x32xf32>
    tpu.vector_store %arg9[%c1, %c0_31, %c0_32], %66 {strides = array<i32>} : memref<2x4x32xf32, #tpu.memory_space<vmem>>, vector<1x4x32xf32>,
    return
  }
  func.func @transform_0(%arg0: i32) -> (i32, i32) {
    %c0_i32 = arith.constant 0 : i32
    %c0_i32_0 = arith.constant 0 : i32
    return %arg0, %c0_i32 : i32, i32
  }
  func.func @transform_1(%arg0: i32) -> (i32, i32) {
    %c0_i32 = arith.constant 0 : i32
    %c0_i32_0 = arith.constant 0 : i32
    %c0_i32_1 = arith.constant 0 : i32
    return %c0_i32, %c0_i32_0 : i32, i32
  }
  func.func @transform_2(%arg0: i32) -> (i32, i32) {
    %c0_i32 = arith.constant 0 : i32
    %c0_i32_0 = arith.constant 0 : i32
    %c0_i32_1 = arith.constant 0 : i32
    return %c0_i32, %c0_i32_0 : i32, i32
  }
  func.func @transform_3(%arg0: i32) -> (i32, i32) {
    %c0_i32 = arith.constant 0 : i32
    %c0_i32_0 = arith.constant 0 : i32
    %c0_i32_1 = arith.constant 0 : i32
    return %c0_i32, %c0_i32_0 : i32, i32
  }
  func.func @transform_4(%arg0: i32) -> (i32, i32) {
    %c0_i32 = arith.constant 0 : i32
    %c0_i32_0 = arith.constant 0 : i32
    %c0_i32_1 = arith.constant 0 : i32
    return %c0_i32, %c0_i32_0 : i32, i32
  }
  func.func @transform_5(%arg0: i32) -> (i32, i32) {
    %c0_i32 = arith.constant 0 : i32
    %c0_i32_0 = arith.constant 0 : i32
    %c0_i32_1 = arith.constant 0 : i32
    return %c0_i32, %c0_i32_0 : i32, i32
  }
  func.func @transform_6(%arg0: i32) -> (i32, i32) {
    %c0_i32 = arith.constant 0 : i32
    %c0_i32_0 = arith.constant 0 : i32
    %c0_i32_1 = arith.constant 0 : i32
    return %c0_i32, %c0_i32_0 : i32, i32
  }
  func.func @transform_7(%arg0: i32) -> (i32, i32) {
    %c0_i32 = arith.constant 0 : i32
    %c0_i32_0 = arith.constant 0 : i32
    %c0_i32_1 = arith.constant 0 : i32
    return %c0_i32, %c0_i32_0 : i32, i32
  }
  func.func @transform_8(%arg0: i32) -> (i32, i32, i32) {
    %c0_i32 = arith.constant 0 : i32
    %c0_i32_0 = arith.constant 0 : i32
    %c0_i32_1 = arith.constant 0 : i32
    return %arg0, %c0_i32, %c0_i32_0 : i32, i32, i32
  }
}

</mosaic_0001>

<bundles_post_ra>
// kernel: tpu_custom_call.1
= control target key start
LH: loop header
LB: loop body
LE: loop exit
PB: predicated region body
PF: predicated region fallthrough
CT: control target
= control target key end

     0   :  { %13 = vsyncpa [#allocation3], 0  ;;  %s1413_s0 = inlined_call_operand.vmem [shape: f32[128,16], index: 0, kind: input, shape index: {}]   ;;  %s1414_s1 = inlined_call_operand.vmem [shape: f32[16,16], index: 1, kind: input, shape index: {}]   ;;  %s1415_s2 = inlined_call_operand.vmem [shape: f32[1,16], index: 2, kind: input, shape index: {}]   ;;  %s1416_s3 = inlined_call_operand.vmem [shape: f32[16,16], index: 3, kind: input, shape index: {}]   ;;  %s1417_s4 = inlined_call_operand.vmem [shape: f32[1,16], index: 4, kind: input, shape index: {}]   ;;  %s1418_s5 = inlined_call_operand.vmem [shape: f32[4,16], index: 5, kind: input, shape index: {}]   ;;  %s1419_s6 = inlined_call_operand.vmem [shape: f32[32,32], index: 6, kind: input, shape index: {}]   ;;  %s1420_s7 = inlined_call_operand.vmem [shape: f32[8,32], index: 7, kind: input, shape index: {}]   ;;  %s1421_s8 = inlined_call_operand.hbm [shape: f32[4,4,32], index: 8, kind: output, shape index: {}]  }
   0x1   :  { %15 = vsyncpa [#allocation3 + $0x1], 0  ;;  %s1112_s27 = smov 0   ;;  %s1114_s28 = smov 0  }
   0x2   :  { %s1116_s29 = smov 0   ;;  %s1118_s30 = smov 0  }
   0x3 LB: > { %s877_s9 = sadd.s32 4294967295, %s1060_s30   ;;  %s878_s10 = sadd.s32 4294967294, %s1060_s30   ;;  %s1060_s30 = sphi %s1118_s30, %s1427_s30   ;;  %s1056_s29 = sphi %s1116_s29, %s1426_s29   ;;  %s1052_s28 = sphi %s1114_s28, %s1425_s28   ;;  %s1048_s27 = sphi %s1112_s27, %s1424_s27  }
   0x4   : > { %s1135_s11 = sadd.s32 1, %s1060_s30   ;;  %s201_s12 = sadd.s32 1, %s1056_s29 }
   0x5   : > { %s198_s13 = ssub.s32 %s1060_s30, %s1135_s11  ;;  %p211_p0 = scmp.ne.s32.totalorder %s1056_s29, %s1052_s28 }
   0x6   : > { %p199_p1 = scmp.eq.s32.totalorder %s198_s13, 0  ;;  %p212_p2 = scmp.eq.s32.totalorder %s877_s9, 1 }
   0x7   : > { %p217_p3 = scmp.ne.s32.totalorder %s1052_s28, %s1048_s27  ;;  %p218_p4 = scmp.eq.s32.totalorder %s878_s10, 1 }
   0x8   : > { %s1145_s14 = scalar_select %p199_p1, %s1056_s29, %s201_s12  }
   0x9   : > { %p1147_p5 = por %p212_p2, %p211_p0  ;;  %p1151_p6 = por %p218_p4, %p217_p3 }
   0xa   : > { %p881_p7 = scmp.ge.s32.totalorder %s1060_s30, 1  ;;  %p266_p8 = scmp.lt.s32.totalorder %s1060_s30, 3 }
   0xc   : > { %p267_p9 = pnand %p881_p7, %p266_p8 }
   0xd   : > { %s1157_s17 = sshll.u32 (!%p267_p9), %s877_s9, 3  ;;  %s1064_s23 = smov (!%p267_p9), 1e-24  }
   0xe   : > { %270 = sbr.rel (%p267_p9) target bundleno = 1326 (0x52e), region = 52  ;;  %p301_p10 = scmp.lt.s32.totalorder (!%p267_p9), %s1157_s17, 15 }
   0xf   : > { %s297_s25 = sand.u32 (!%p267_p9), 1, %s1052_s28   ;;  %s812_s20 = scalar_lea.hbm (!%p267_p9), %s1421_s8, %s1157_s17 }
  0x10   : > { %s882_s26 = sshll.u32 (!%p267_p9), %s297_s25, 3 }
  0x11   : > { %s299_s13 = scalar_lea.vmem (!%p267_p9), [#allocation2], %s882_s26 }
  0x12   : > { %s813_s21 = sshll.u32 (!%p267_p9), %s299_s13, 4  ;;  %s814_s21 = int_to_ptr.vmem [resolvable:$true] %s813_s21 }
  0x13   : > { %s302_s18 = scalar_select %p301_p10, %s1157_s17, 15  ;;  %vm315_vm0 = vcmask 130048   ;;  %v1062_v16 = vmov 16.0   ;;  %v500_v63 = vld [vmem:[%s1414_s1 + $0x8] sm:$0xff] }
  0x14   : > { %976 = vrcp.f32 %v1062_v16  ;;  %543 = vmatpush.msra.mxu0 %v500_v63  ;;  %918 = vmatpush.msra.mxu3 %v500_v63 }
  0x15   : > { %s884_s19 = sshll.u32 %s302_s18, 3 }
  0x16   : > { %s304_s22 = scalar_lea.vmem %s1413_s0, %s884_s19  ;;  %s1063_s19 = smov 96  }
  0x17   : > { %v1164_v0 = vld [vmem:[%s304_s22 + $0x38] sm:$0xff]  ;;  %v1166_v1 = vld [vmem:[%s304_s22 + $0x30] sm:$0xff]  ;;  %v1168_v2 = vld [vmem:[%s304_s22] sm:$0xff] }
  0x18   : > { %v337_v3 = vsel %vm315_vm0, %v1164_v0, 0.0  ;;  %v334_v4 = vsel %vm315_vm0, %v1166_v1, 0.0  ;;  %v316_v5 = vsel %vm315_vm0, %v1168_v2, 0.0  ;;  %v1176_v6 = vld [vmem:[%s304_s22 + $0x18] sm:$0xff]  ;;  %v1178_v7 = vld [vmem:[%s304_s22 + $0x10] sm:$0xff]  ;;  %v1180_v8 = vld [vmem:[%s304_s22 + $0x8] sm:$0xff] }
  0x19   : > { %338 = vadd.xlane.f32.xlu2 %v337_v3  ;;  %335 = vadd.xlane.f32.xlu1 %v334_v4  ;;  %v325_v9 = vsel %vm315_vm0, %v1176_v6, 0.0  ;;  %v322_v10 = vsel %vm315_vm0, %v1178_v7, 0.0  ;;  %v319_v11 = vsel %vm315_vm0, %v1180_v8, 0.0  ;;  %v1188_v12 = vld [vmem:[%s304_s22 + $0x28] sm:$0xff]  ;;  %v1190_v13 = vld [vmem:[%s304_s22 + $0x20] sm:$0xff] }
  0x1a   : > { %317 = vadd.xlane.f32.xlu0 %v316_v5  ;;  %v331_v14 = vsel %vm315_vm0, %v1188_v12, 0.0  ;;  %v328_v15 = vsel %vm315_vm0, %v1190_v13, 0.0  ;;  %v977_v17 = vpop.eup %976  ;;  %v499_v3 = vld [vmem:[%s1414_s1] sm:$0xff] }
  0x1b   : > { %v341_v18 = vmul.f32 16.0, %v977_v17  ;;  %vm345_vm1 = vweird.f32 %v977_v17  ;;  %544 = vmatpush.msra.mxu0 %v499_v3  ;;  %919 = vmatpush.msra.mxu3 %v499_v3 }
  0x1d   : > { %v342_v19 = vsub.f32 1.0, %v341_v18 }
  0x1f   : > { %v343_v20 = vmul.f32 %v977_v17, %v342_v19 }
  0x21   : > { %326 = vadd.xlane.f32.xlu2 %v325_v9  ;;  %323 = vadd.xlane.f32.xlu1 %v322_v10  ;;  %v344_v21 = vadd.f32 %v977_v17, %v343_v20 }
  0x22   : > { %320 = vadd.xlane.f32.xlu0 %v319_v11 }
  0x23   : > { %v1196_v22 = vsel %vm345_vm1, %v977_v17, %v344_v21 }
  0x29   : > { %332 = vadd.xlane.f32.xlu1 %v331_v14 }
  0x2a   : > { %329 = vadd.xlane.f32.xlu0 %v328_v15 }
  0x8c   : > { %v339_v23 = vpop.xlane.xlu2 %338  ;;  %v336_v24 = vpop.xlane.xlu1 %335 }
  0x8d   : > { %v353_v25 = vmul.f32 %v1196_v22, %v336_v24  ;;  %v318_v26 = vpop.xlane.xlu0 %317  ;;  %v354_v39 = vmul.f32 %v1196_v22, %v339_v23 }
  0x8e   : > { %v347_v27 = vmul.f32 %v1196_v22, %v318_v26 }
  0x8f   : > { %v1201_v28 = vsub.f32 %v1166_v1, %v353_v25  ;;  %v1230_v46 = vsub.f32 %v1164_v0, %v354_v39 }
  0x90   : > { %v1204_v29 = vsub.f32 %v1168_v2, %v347_v27 }
  0x91   : > { %v369_v30 = vmul.f32 %v1201_v28, %v1201_v28  ;;  %v370_v55 = vmul.f32 %v1230_v46, %v1230_v46 }
  0x92   : > { %v363_v31 = vmul.f32 %v1204_v29, %v1204_v29 }
  0x93   : > { %v389_v32 = vsel %vm315_vm0, %v369_v30, 0.0  ;;  %v392_v58 = vsel %vm315_vm0, %v370_v55, 0.0 }
  0x94   : > { %v327_v33 = vpop.xlane.xlu2 %326  ;;  %390 = vadd.xlane.f32.xlu1 %v389_v32  ;;  %v324_v34 = vpop.xlane.xlu1 %323  ;;  %v371_v35 = vsel %vm315_vm0, %v363_v31, 0.0 }
  0x95   : > { %v350_v36 = vmul.f32 %v1196_v22, %v327_v33  ;;  %v349_v37 = vmul.f32 %v1196_v22, %v324_v34  ;;  %372 = vadd.xlane.f32.xlu2 %v371_v35  ;;  %v321_v38 = vpop.xlane.xlu0 %320 }
  0x96   : > { %v348_v40 = vmul.f32 %v1196_v22, %v321_v38 }
  0x97   : > { %v1217_v41 = vsub.f32 %v1176_v6, %v350_v36  ;;  %v1220_v42 = vsub.f32 %v1178_v7, %v349_v37 }
  0x98   : > { %v1223_v43 = vsub.f32 %v1180_v8, %v348_v40 }
  0x99   : > { %v366_v44 = vmul.f32 %v1217_v41, %v1217_v41  ;;  %v365_v45 = vmul.f32 %v1220_v42, %v1220_v42 }
  0x9a   : > { %v364_v47 = vmul.f32 %v1223_v43, %v1223_v43 }
  0x9b   : > { %v380_v48 = vsel %vm315_vm0, %v366_v44, 0.0  ;;  %v377_v49 = vsel %vm315_vm0, %v365_v45, 0.0 }
  0x9c   : > { %381 = vadd.xlane.f32.xlu1 %v380_v48  ;;  %v374_v50 = vsel %vm315_vm0, %v364_v47, 0.0  ;;  %v333_v51 = vpop.xlane.xlu1 %332 }
  0x9d   : > { %378 = vadd.xlane.f32.xlu2 %v377_v49  ;;  %375 = vadd.xlane.f32.xlu0 %v374_v50  ;;  %v330_v52 = vpop.xlane.xlu0 %329  ;;  %v352_v54 = vmul.f32 %v1196_v22, %v333_v51 }
  0x9e   : > { %v351_v53 = vmul.f32 %v1196_v22, %v330_v52 }
  0x9f   : > { %v1245_v57 = vsub.f32 %v1188_v12, %v352_v54 }
  0xa0   : > { %v1242_v56 = vsub.f32 %v1190_v13, %v351_v53 }
  0xa1   : > { %v368_v61 = vmul.f32 %v1245_v57, %v1245_v57 }
  0xa2   : > { %v367_v59 = vmul.f32 %v1242_v56, %v1242_v56 }
  0xa3   : > { %v386_v62 = vsel %vm315_vm0, %v368_v61, 0.0 }
  0xa4   : > { %v383_v60 = vsel %vm315_vm0, %v367_v59, 0.0 }
  0xa5   : > { %393 = vadd.xlane.f32.xlu0 %v392_v58  ;;  %384 = vadd.xlane.f32.xlu2 %v383_v60 }
  0xad   : > { %387 = vadd.xlane.f32.xlu0 %v386_v62 }
 0x107   : > { %v391_v4 = vpop.xlane.xlu1 %390 }
 0x108   : > { %v401_v5 = vmul.f32 %v391_v4, %v1196_v22  ;;  %v373_v9 = vpop.xlane.xlu2 %372 }
 0x109   : > { %v395_v10 = vmul.f32 %v373_v9, %v1196_v22 }
 0x10a   : > { %v409_v11 = vadd.f32 1e-05, %v401_v5 }
 0x10b   : > { %v403_v14 = vadd.f32 1e-05, %v395_v10 }
 0x10c   : > { %978 = vrsqrt.f32 %v409_v11  ;;  %vm477_vm2 = vweird.f32 %v409_v11 }
 0x10d   : > { %980 = vrsqrt.f32 %v403_v14  ;;  %vm417_vm6 = vweird.f32 %v403_v14 }
 0x10f   : > { %v382_v15 = vpop.xlane.xlu1 %381 }
 0x110   : > { %v379_v16 = vpop.xlane.xlu2 %378  ;;  %v376_v17 = vpop.xlane.xlu0 %375  ;;  %v398_v18 = vmul.f32 %v382_v15, %v1196_v22 }
 0x111   : > { %v397_v19 = vmul.f32 %v379_v16, %v1196_v22  ;;  %v396_v20 = vmul.f32 %v376_v17, %v1196_v22 }
 0x112   : > { %v979_v21 = vpop.eup %978  ;;  %v1267_v31 = vadd.f32 1e-05, %v398_v18 }
 0x113   : > { %v981_v23 = vpop.eup %980  ;;  %v472_v24 = vmul.f32 %v979_v21, %v409_v11  ;;  %v1265_v25 = vadd.f32 1e-05, %v397_v19  ;;  %v404_v26 = vadd.f32 1e-05, %v396_v20  ;;  %vm478_vm3 = vweird.f32 %v979_v21 }
 0x114   : > { %v412_v27 = vmul.f32 %v981_v23, %v403_v14  ;;  %vm418_vm4 = vweird.f32 %v981_v23  ;;  %vm479_vm5 = vmor %vm477_vm2, %vm478_vm3  ;;  %vm447_vm2 = vweird.f32 %v1267_v31 }
 0x115   : > { %v473_v30 = vmul.f32 %v979_v21, %v472_v24  ;;  %982 = vrsqrt.f32 %v1265_v25  ;;  %vm419_vm7 = vmor %vm417_vm6, %vm418_vm4  ;;  %vm427_vm9 = vweird.f32 %v404_v26  ;;  %vm437_vm11 = vweird.f32 %v1265_v25 }
 0x116   : > { %v413_v32 = vmul.f32 %v981_v23, %v412_v27  ;;  %984 = vrsqrt.f32 %v404_v26 }
 0x117   : > { %v474_v33 = vmul.f32 0.5, %v473_v30  ;;  %986 = vrsqrt.f32 %v1267_v31 }
 0x118   : > { %v414_v34 = vmul.f32 0.5, %v413_v32  ;;  %v385_v35 = vpop.xlane.xlu2 %384  ;;  %v394_v36 = vpop.xlane.xlu0 %393 }
 0x119   : > { %v475_v37 = vsub.f32 1.5, %v474_v33  ;;  %v399_v38 = vmul.f32 %v385_v35, %v1196_v22  ;;  %v402_v39 = vmul.f32 %v394_v36, %v1196_v22 }
 0x11a   : > { %v415_v40 = vsub.f32 1.5, %v414_v34 }
 0x11b   : > { %v1273_v44 = vpop.eup %982  ;;  %v410_v45 = vadd.f32 1e-05, %v402_v39  ;;  %v476_v50 = vmul.f32 %v979_v21, %v475_v37  ;;  %v1277_v52 = vadd.f32 1e-05, %v399_v38 }
 0x11c   : > { %v985_v47 = vpop.eup %984  ;;  %v432_v48 = vmul.f32 %v1273_v44, %v1265_v25  ;;  %v416_v49 = vmul.f32 %v981_v23, %v415_v40  ;;  %vm438_vm12 = vweird.f32 %v1273_v44 }
 0x11d   : > { %v422_v51 = vmul.f32 %v985_v47, %v404_v26  ;;  %988 = vrsqrt.f32 %v410_v45  ;;  %v1280_v54 = vpop.eup %986  ;;  %v480_v59 = vsel %vm479_vm5, %v979_v21, %v476_v50  ;;  %vm428_vm8 = vweird.f32 %v985_v47  ;;  %vm439_vm14 = vmor %vm437_vm11, %vm438_vm12 }
 0x11e   : > { %v433_v53 = vmul.f32 %v1273_v44, %v432_v48  ;;  %v420_v58 = vsel %vm419_vm7, %v981_v23, %v416_v49  ;;  %v497_v62 = vmul.f32 %v480_v59, %v1201_v28  ;;  %990 = vrsqrt.f32 %v1277_v52  ;;  %vm429_vm10 = vmor %vm427_vm9, %vm428_vm8 }
 0x11f   : > { %v423_v55 = vmul.f32 %v985_v47, %v422_v51  ;;  %v491_v61 = vmul.f32 %v420_v58, %v1204_v29  ;;  %v442_v4 = vmul.f32 %v1280_v54, %v1267_v31  ;;  %vm487_vm15 = vweird.f32 %v410_v45  ;;  %v578_v51 = vld [vmem:[%s1416_s3] sm:$0xff] }
 0x120   : > { %v388_v60 = vpop.xlane.xlu0 %387  ;;  %v434_v5 = vmul.f32 0.5, %v433_v53  ;;  %891 = vmatmul.msk.f32.vlgmr.msra.gmra.mxu3 %vm315_vm0, %v497_v62  ;;  %vm448_vm3 = vweird.f32 %v1280_v54  ;;  %vm457_vm5 = vweird.f32 %v1277_v52  ;;  %vm717_vm11 = vcmask 261120  }
 0x121   : > { %v424_v63 = vmul.f32 0.5, %v423_v55  ;;  %v400_v3 = vmul.f32 %v388_v60, %v1196_v22  ;;  %885 = vmatmul.msk.f32.vlgmr.msra.gmra.mxu0 %vm315_vm0, %v491_v61  ;;  %v443_v28 = vmul.f32 %v1280_v54, %v442_v4  ;;  %vm449_vm4 = vmor %vm447_vm2, %vm448_vm3  ;;  %vm742_vm12 = vcmask 257024  }
 0x122   : > { %v435_v14 = vsub.f32 1.5, %v434_v5 }
 0x123   : > { %v425_v9 = vsub.f32 1.5, %v424_v63  ;;  %v989_v10 = vpop.eup %988  ;;  %v408_v29 = vadd.f32 1e-05, %v400_v3  ;;  %v444_v20 = vmul.f32 0.5, %v443_v28 }
 0x124   : > { %v482_v11 = vmul.f32 %v989_v10, %v410_v45  ;;  %v991_v16 = vpop.eup %990  ;;  %v436_v23 = vmul.f32 %v1273_v44, %v435_v14  ;;  %vm488_vm13 = vweird.f32 %v989_v10 }
 0x125   : > { %v426_v15 = vmul.f32 %v985_v47, %v425_v9  ;;  %992 = vrsqrt.f32 %v408_v29  ;;  %v452_v21 = vmul.f32 %v991_v16, %v1277_v52  ;;  %v445_v27 = vsub.f32 1.5, %v444_v20  ;;  %vm489_vm1 = vmor %vm487_vm15, %vm488_vm13 }
 0x126   : > { %v483_v22 = vmul.f32 %v989_v10, %v482_v11  ;;  %v440_v30 = vsel %vm439_vm14, %v1273_v44, %v436_v23  ;;  %vm458_vm6 = vweird.f32 %v991_v16  ;;  %vm467_vm8 = vweird.f32 %v408_v29 }
 0x127   : > { %v430_v17 = vsel %vm429_vm10, %v985_v47, %v426_v15  ;;  %v453_v25 = vmul.f32 %v991_v16, %v452_v21  ;;  %v493_v34 = vmul.f32 %v440_v30, %v1220_v42  ;;  %v446_v37 = vmul.f32 %v1280_v54, %v445_v27  ;;  %vm459_vm7 = vmor %vm457_vm5, %vm458_vm6 }
 0x128   : > { %v484_v18 = vmul.f32 0.5, %v483_v22  ;;  %v492_v19 = vmul.f32 %v430_v17, %v1223_v43 }
 0x129   : > { %v454_v35 = vmul.f32 0.5, %v453_v25  ;;  %v450_v40 = vsel %vm449_vm4, %v1280_v54, %v446_v37  ;;  %vm798_vm4 = vcmask 261124  }
 0x12a   : > { %v485_v24 = vsub.f32 1.5, %v484_v18  ;;  %886 = vmatmul.msk.f32.gmra.mxu0 %vm315_vm0, %v492_v19 }
 0x12b   : > { %v993_v43 = vpop.eup %992  ;;  %v455_v38 = vsub.f32 1.5, %v454_v35 }
 0x12c   : > { %v486_v26 = vmul.f32 %v989_v10, %v485_v24  ;;  %v462_v36 = vmul.f32 %v993_v43, %v408_v29  ;;  %vm468_vm9 = vweird.f32 %v993_v43  ;;  %v975_v24 = vld [vmem:[%s1417_s4] ss:$0 sm:$0xff] }
 0x12d   : > { %v456_v42 = vmul.f32 %v991_v16, %v455_v38  ;;  %vm469_vm10 = vmor %vm467_vm8, %vm468_vm9 }
 0x12e   : > { %v490_v32 = vsel %vm489_vm1, %v989_v10, %v486_v26  ;;  %v463_v39 = vmul.f32 %v993_v43, %v462_v36 }
 0x12f   : > { %v498_v33 = vmul.f32 %v490_v32, %v1230_v46  ;;  %v494_v46 = vmul.f32 %v450_v40, %v1217_v41  ;;  %v460_v45 = vsel %vm459_vm7, %v991_v16, %v456_v42  ;;  %v579_v41 = vld [vmem:[%s1416_s3 + $0x8] sm:$0xff] }
 0x130   : > { %v464_v31 = vmul.f32 0.5, %v463_v39  ;;  %v495_v47 = vmul.f32 %v460_v45, %v1242_v56  ;;  %622 = vmatpush.msra.mxu1 %v579_v41  ;;  %920 = vmatpush.msrb.mxu3 %v579_v41  ;;  %v974_v56 = vld [vmem:[%s1415_s2] ss:$0 sm:$0xff] }
 0x131   : > { %892 = vmatmul.msk.f32.gmra.mxu3 %vm315_vm0, %v498_v33 }
 0x132   : > { %887 = vmatmul.msk.f32.gmra.mxu0 %vm315_vm0, %v493_v34  ;;  %v465_v44 = vsub.f32 1.5, %v464_v31  ;;  %623 = vmatpush.msra.mxu1 %v578_v51 }
 0x133   : > { %921 = vmatpush.msrb.mxu3 %v578_v51 }
 0x134   : > { %v466_v48 = vmul.f32 %v993_v43, %v465_v44 }
 0x136   : > { %v470_v49 = vsel %vm469_vm10, %v993_v43, %v466_v48  ;;  %v716_v48 = vld [vmem:[%s1420_s7] sm:$0xff] }
 0x137   : > { %v496_v50 = vmul.f32 %v470_v49, %v1245_v57 }
 0x13a   : > { %888 = vmatmul.msk.f32.gmra.mxu0 %vm315_vm0, %v494_v46 }
 0x142   : > { %889 = vmatmul.msk.f32.gmra.mxu0 %vm315_vm0, %v495_v47 }
 0x14a   : > { %890 = vmatmul.msk.f32.gmra.mxu0 %vm315_vm0, %v496_v50 }
 0x19e   : > { %v546_v52 = vpop.f32.mrf.mxu0 }
 0x19f   : > { %v547_v57 = vadd.f32 %v974_v56, %v546_v52 }
 0x1a1   : > { %v570_v53 = vmax.f32 %v547_v57, 0.0 }
 0x1a3   : > { %893 = vmatmul.msk.f32.vlgmr.msra.gmra.mxu1 %vm315_vm0, %v570_v53  ;;  %v564_v54 = vpop.f32.mrf.mxu3 }
 0x1a4   : > { %v565_v55 = vadd.f32 %v974_v56, %v564_v54 }
 0x1a6   : > { %v576_v58 = vmax.f32 %v565_v55, 0.0 }
 0x1a7   : > { %v549_v59 = vpop.f32.mrf.mxu0 }
 0x1a8   : > { %v550_v60 = vadd.f32 %v974_v56, %v549_v59  ;;  %899 = vmatmul.msk.f32.vlgmr.msrb.gmra.mxu3 %vm315_vm0, %v576_v58 }
 0x1aa   : > { %v571_v61 = vmax.f32 %v550_v60, 0.0 }
 0x1ac   : > { %894 = vmatmul.msk.f32.gmra.mxu1 %vm315_vm0, %v571_v61 }
 0x1af   : > { %v552_v62 = vpop.f32.mrf.mxu0 }
 0x1b0   : > { %v553_v63 = vadd.f32 %v974_v56, %v552_v62 }
 0x1b2   : > { %v572_v3 = vmax.f32 %v553_v63, 0.0 }
 0x1b4   : > { %895 = vmatmul.msk.f32.gmra.mxu1 %vm315_vm0, %v572_v3  ;;  %v567_v4 = vpop.f32.mrf.mxu3 }
 0x1b5   : > { %v568_v5 = vadd.f32 %v974_v56, %v567_v4 }
 0x1b7   : > { %v577_v9 = vmax.f32 %v568_v5, 0.0  ;;  %v555_v10 = vpop.f32.mrf.mxu0 }
 0x1b8   : > { %v556_v11 = vadd.f32 %v974_v56, %v555_v10 }
 0x1b9   : > { %900 = vmatmul.msk.f32.gmra.mxu3 %vm315_vm0, %v577_v9 }
 0x1ba   : > { %v573_v29 = vmax.f32 %v556_v11, 0.0 }
 0x1bc   : > { %896 = vmatmul.msk.f32.gmra.mxu1 %vm315_vm0, %v573_v29 }
 0x1bf   : > { %v558_v28 = vpop.f32.mrf.mxu0 }
 0x1c0   : > { %v559_v14 = vadd.f32 %v974_v56, %v558_v28 }
 0x1c2   : > { %v574_v15 = vmax.f32 %v559_v14, 0.0 }
 0x1c4   : > { %897 = vmatmul.msk.f32.gmra.mxu1 %vm315_vm0, %v574_v15 }
 0x1c7   : > { %v561_v16 = vpop.f32.mrf.mxu0 }
 0x1c8   : > { %v562_v22 = vadd.f32 %v974_v56, %v561_v16 }
 0x1ca   : > { %v575_v17 = vmax.f32 %v562_v22, 0.0 }
 0x1cc   : > { %898 = vmatmul.msk.f32.gmra.mxu1 %vm315_vm0, %v575_v17 }
 0x220   : > { %v625_v18 = vpop.f32.mrf.mxu1 }
 0x221   : > { %v626_v46 = vadd.f32 %v975_v24, %v625_v18 }
 0x223   : > { %v649_v31 = vadd.f32 %v626_v46, %v1168_v2  ;;  %v713_v2 = vld [vmem:[%s1419_s6 + $0x8] sm:$0xff] }
 0x229   : > { %v628_v19 = vpop.f32.mrf.mxu1 }
 0x22b   : > { %v643_v21 = vpop.f32.mrf.mxu3 }
 0x22c   : > { %v644_v25 = vadd.f32 %v975_v24, %v643_v21 }
 0x22e   : > { %v655_v32 = vadd.f32 %v644_v25, %v1166_v1  ;;  %v629_v1 = vadd.f32 %v975_v24, %v628_v19 }
 0x231   : > { %v631_v20 = vpop.f32.mrf.mxu1 }
 0x239   : > { %v634_v23 = vpop.f32.mrf.mxu1 }
 0x23a   : > { %v635_v37 = vadd.f32 %v975_v24, %v634_v23 }
 0x23c   : > { %v646_v26 = vpop.f32.mrf.mxu3  ;;  %v652_v39 = vadd.f32 %v635_v37, %v1176_v6  ;;  %v657_v6 = vld [vmem:[%s1418_s5] sm:$0xf] }
 0x23d   : > { %v647_v27 = vadd.f32 %v975_v24, %v646_v26 }
 0x23f   : > { %v656_v30 = vadd.f32 %v647_v27, %v1164_v0  ;;  %v632_v0 = vadd.f32 %v975_v24, %v631_v20 }
 0x241   : > { %v637_v43 = vpop.f32.mrf.mxu1  ;;  %901 = vmatpush.xpose.msk.msra.mxu2 %vm315_vm0, %v656_v30  ;;  %v651_v40 = vadd.f32 %v632_v0, %v1178_v7  ;;  %v715_v7 = vld [vmem:[%s1419_s6 + $0x18] sm:$0xff] }
 0x242   : > { %v638_v35 = vadd.f32 %v975_v24, %v637_v43  ;;  %733 = vmatpush.msra.mxu3 %v715_v7 }
 0x244   : > { %v653_v38 = vadd.f32 %v638_v35, %v1190_v13  ;;  %v712_v13 = vld [vmem:[%s1419_s6] sm:$0xff] }
 0x245   : > { %902 = vmatpush.xpose.msk.msra.mxu2 %vm315_vm0, %v655_v32 }
 0x249   : > { %v640_v33 = vpop.f32.mrf.mxu1 }
 0x24a   : > { %v641_v34 = vadd.f32 %v975_v24, %v640_v33 }
 0x24c   : > { %v654_v36 = vadd.f32 %v641_v34, %v1188_v12  ;;  %v650_v12 = vadd.f32 %v629_v1, %v1180_v8  ;;  %v714_v8 = vld [vmem:[%s1419_s6 + $0x10] sm:$0xff] }
 0x24d   : > { %734 = vmatpush.msra.mxu3 %v714_v8 }
 0x24e   : > { %903 = vmatpush.xpose.msk.msra.mxu2 %vm315_vm0, %v654_v36 }
 0x24f   : > { %735 = vmatpush.msra.mxu3 %v713_v2 }
 0x251   : > { %736 = vmatpush.msra.mxu3 %v712_v13 }
 0x252   : > { %904 = vmatpush.xpose.msk.msra.mxu2 %vm315_vm0, %v653_v38 }
 0x256   : > { %905 = vmatpush.xpose.msk.msra.mxu2 %vm315_vm0, %v652_v39 }
 0x25a   : > { %906 = vmatpush.xpose.msk.msra.mxu2 %vm315_vm0, %v651_v40 }
 0x25e   : > { %907 = vmatpush.xpose.msk.msra.mxu2 %vm315_vm0, %v650_v12 }
 0x262   : > { %908 = vmatpush.xpose.msk.msra.mxu2 %vm315_vm0, %v649_v31 }
 0x265   : > { %909 = vmatmul.msk.f32.vlgmr.msra.gmra.mxu2 %vm315_vm0, %v657_v6  ;;  %vm710_vm0 = vcmask 1043456  }
 0x2e8   : > { %v702_v42 = vpop.f32.mrf.mxu2 }
 0x2e9   : > { %v706_v44 = vrot.slane %v702_v42, 4 }
 0x2eb   : > { %707 = vrot.lane.b32.xlu1 %v706_v44, %s1063_s19 }
 0x35d   : > { %v708_v45 = vpop.permute.xlu1 %707 }
 0x35e   : > { %v711_v47 = vsel %vm710_vm0, %v702_v42, %v708_v45 }
 0x35f   : > { %910 = vmatmul.msk.f32.vlgmr.msra.gmra.mxu3 %vm717_vm11, %v711_v47 }
 0x3e2   : > { %v738_v49 = vpop.f32.mrf.mxu3 }
 0x3e3   : > { %v1368_v50 = vadd.f32 %v738_v49, %v716_v48 }
 0x3e5   : > { %v741_v41 = vmul.f32 %v1368_v50, %v1368_v50 }
 0x3e7   : > { %v743_v51 = vsel %vm742_vm12, %v741_v41, 0.0  ;;  %v770_v56 = vrot.slane %v741_v41, 4 }
 0x3e8   : > { %744 = vadd.xlane.f32.xlu2 %v743_v51 }
 0x3e9   : > { %v772_v52 = vsel %vm742_vm12, %v770_v56, 0.0 }
 0x3ea   : > { %773 = vadd.xlane.f32.xlu0 %v772_v52 }
 0x45b   : > { %v745_v57 = vpop.xlane.xlu2 %744 }
 0x45c   : > { %v746_v53 = vrot.slane %v745_v57, 4 }
 0x45d   : > { %v774_v61 = vpop.xlane.xlu0 %773 }
 0x45e   : > { %v747_v54 = vadd.f32 %v746_v53, %v745_v57  ;;  %v775_v62 = vrot.slane %v774_v61, 4 }
 0x460   : > { %v748_v55 = vrot.slane %v747_v54, 2  ;;  %v776_v3 = vadd.f32 %v775_v62, %v774_v61 }
 0x462   : > { %v749_v58 = vadd.f32 %v748_v55, %v747_v54  ;;  %v777_v4 = vrot.slane %v776_v3, 2 }
 0x464   : > { %v750_v59 = vrot.slane %v749_v58, 1  ;;  %v778_v10 = vadd.f32 %v777_v4, %v776_v3 }
 0x466   : > { %v751_v60 = vadd.f32 %v750_v59, %v749_v58  ;;  %v779_v14 = vrot.slane %v778_v10, 1 }
 0x468   : > { %922 = vpush %v751_v60  ;;  %v780_v22 = vadd.f32 %v779_v14, %v778_v10 }
 0x499   : > { %s923_s22 = spop %922 }
 0x49a   : > { %s753_s24 = smax.f32 %s1064_s23, %s923_s22  ;;  %s815_s22 = sshll.u32 %s812_s20, 4  ;;  %s816_s22 = int_to_ptr.hbm [resolvable:$true] %s815_s22 }
 0x49b   : > { %v754_v63 = vstv %s753_s24  ;;  %s801_s24 = scalar_lea.sflag [#allocation3], %s297_s25  ;;  %s1012_s26 = sshra.s32 %s816_s22, 4  ;;  %s1013_s26 = int_to_ptr.hbm [resolvable:$true] %s1012_s26 }
 0x49c   : > { %994 = vrsqrt.f32 %v754_v63  ;;  %vm761_vm14 = vweird.f32 %v754_v63  ;;  %p1019_p0 = scmp.lt.s32.totalorder %s1013_s26, %s1421_s8 }
 0x4a2   : > { %v995_v5 = vpop.eup %994 }
 0x4a3   : > { %v756_v9 = vmul.f32 %v995_v5, %v754_v63  ;;  %vm762_vm13 = vweird.f32 %v995_v5 }
 0x4a4   : > { %vm763_vm15 = vmor %vm761_vm14, %vm762_vm13 }
 0x4a5   : > { %v757_v11 = vmul.f32 %v995_v5, %v756_v9 }
 0x4a7   : > { %v758_v29 = vmul.f32 0.5, %v757_v11 }
 0x4a9   : > { %v759_v28 = vsub.f32 1.5, %v758_v29 }
 0x4ab   : > { %v760_v15 = vmul.f32 %v995_v5, %v759_v28 }
 0x4ad   : > { %v764_v16 = vsel %vm763_vm15, %v995_v5, %v760_v15 }
 0x4ae   : > { %924 = vpush %v764_v16 }
 0x4af   : > { %926 = vpush %v780_v22 }
 0x4df   : > { %s925_s9 = spop %924 }
 0x4e0   : > { %v766_v17 = vstv %s925_s9  ;;  %s927_s10 = spop %926  ;;  %s1014_s9 = scalar_lea.hbm %s1013_s26, 8 }
 0x4e1   : > { %v767_v18 = vmul.f32 %v766_v17, %v1368_v50  ;;  %s782_s12 = smax.f32 %s1064_s23, %s927_s10  ;;  %p1015_p11 = scmp.ne.s32.totalorder %s1013_s26, %s1014_s9 }
 0x4e2   : > { %v783_v19 = vstv %s782_s12  ;;  %s1018_s12 = scalar_lea.hbm %s1421_s8, 16 }
 0x4e3   : > { %768 = vst.msk [vmem:[%s299_s13] sm:$0xf] %vm742_vm12, %v767_v18  ;;  %996 = vrsqrt.f32 %v783_v19  ;;  %vm790_vm2 = vweird.f32 %v783_v19  ;;  %p1016_p12 = pnand %p1015_p11, %p1147_p5  ;;  %p1020_p1 = scmp.lt.s32.totalorder %s1018_s12, %s1014_s9 }
 0x4e5   : > { %p1017_p13 = pneg %p1016_p12  ;;  %p1021_p2 = por %p1020_p1, %p1019_p0 }
 0x4e7   : > { %p1022_p3 = pnand %p1021_p2, %p1017_p13 }
 0x4e9   : > { %v997_v20 = vpop.eup %996 }
 0x4ea   : > { %v785_v21 = vmul.f32 %v997_v20, %v783_v19  ;;  %vm791_vm1 = vweird.f32 %v997_v20 }
 0x4eb   : > { %vm792_vm3 = vmor %vm790_vm2, %vm791_vm1 }
 0x4ec   : > { %v786_v23 = vmul.f32 %v997_v20, %v785_v21 }
 0x4ee   : > { %v787_v24 = vmul.f32 0.5, %v786_v23 }
 0x4f0   : > { %v788_v26 = vsub.f32 1.5, %v787_v24 }
 0x4f2   : > { %v789_v27 = vmul.f32 %v997_v20, %v788_v26 }
 0x4f4   : > { %v793_v25 = vsel %vm792_vm3, %v997_v20, %v789_v27 }
 0x4f5   : > { %928 = vpush %v793_v25 }
 0x526   : > { %s929_s23 = spop %928 }
 0x527   : > { %v795_v30 = vstv %s929_s23 }
 0x528   : > { %v796_v43 = vmul.f32 %v795_v30, %v1368_v50 }
 0x52a   : > { %911 = vst.msk [vmem:[%s299_s13] sm:$0xf0] %vm798_vm4, %v796_v43 }
 0x52b   : > { %1025 = shalt.err (!%p1022_p3)
}
 0x52c   : > { %s1065_s25 = smov 64   ;;  %s1066_s13 = smov 4  }
 0x52d   : > { %930 = dma.vmem_to_hbm [thread:$0]  (%p1147_p5), %s814_s21, 128, %s816_s22, %s801_s24, %s1065_s25, %s1065_s25, %s1066_s13  }
 0x52e PF: > { %p936_p4 = scmp.ge.s32.totalorder %s1060_s30, 2  ;;  %s830_s20 = sand.u32 1, %s1048_s27  }
 0x52f   : > { %s831_s23 = scalar_lea.sflag [#allocation3], %s830_s20 }
 0x530   : > { %p933_p7 = pnand %p936_p4, %p1151_p6 }
 0x532   : > { %p934_p8 = pneg %p933_p7 }
 0x534   : > { %1043 = dma.done.wait (%p934_p8), %s831_s23, 128  }
 0x535   : > { %1045 = vsyncadd (%p934_p8), %s831_s23, 4294967168  ;;  %p18_p9 = scmp.ge.s32.totalorder %s1135_s11, 4   ;;  %s1424_s27 = smov %s1052_s28 }
 0x536   : > { %s1425_s28 = smov %s1056_s29  ;;  %s1426_s29 = smov %s1145_s14 }
 0x537   : > { %s1427_s30 = smov %s1135_s11  ;;  %20 = sbr.rel (!%p18_p9) target bundleno = 3 (0x3), region = 88 }
 0x53c   :  { %837 = vsyncpa [#allocation3], 1 }
 0x53d   :  { %839 = vsyncpa [#allocation3 + $0x1], 1 }

</bundles_post_ra>
